<compile_context>
chip_gen: v6e
topology: v6e:2x2x1
jax: 0.10.0
libtpu: 0.0.40
codegen_flags: <defaults>
</compile_context>

<pallas_src>
import jax
import jax.numpy as jnp
from jax import lax
from jax.experimental import pallas as pl
from jax.experimental.pallas import tpu as pltpu


def generator_kernel(x_ref, w_ref, o_ref):
    # x_ref: (tm, E) in x.dtype, w_ref: (V, E) bf16, o_ref: (tm, V) in x.dtype
    # Cast x to bf16 *inside* the kernel (no extra wrapper pass over x) and
    # contract on the E axis of both operands (x @ W^T) on the MXU with f32
    # accumulation.  The weight keeps its (V, E) PyTorch layout.
    logits = lax.dot_general(
        x_ref[...].astype(jnp.bfloat16),
        w_ref[...],
        dimension_numbers=(((1,), (1,)), ((), ())),
        preferred_element_type=jnp.float32,
    )
    t = jnp.tanh(logits)
    # tanh output is bounded in [-1, 1], so exp() cannot overflow: skip the
    # usual max-subtraction of a stable log-softmax (free filler removal on
    # the EUP-bound compute side).
    lse = jnp.log(jnp.sum(jnp.exp(t), axis=-1, keepdims=True))
    o_ref[...] = (t - lse).astype(o_ref.dtype)


def _round_up(a, m):
    return ((a + m - 1) // m) * m


def _sublane(dtype):
    # Minimum sublane multiple for a dense tile of this dtype: 8 f32, 16 bf16.
    return max(8, 32 // jnp.dtype(dtype).itemsize)


def generator_forward(x, weight, *, tm=2048):
    """x: (..., emb);  weight: (vocab, emb)  (PyTorch nn.Linear layout).

    Returns (..., vocab) log-probabilities in x.dtype (all math in f32).
    """
    *lead, e = x.shape
    v, e2 = weight.shape
    assert e == e2, "weight must be (vocab, emb)"
    m_rows = 1
    for d in lead:
        m_rows *= d

    out_dtype = x.dtype
    align = _sublane(x.dtype)

    # Row tiling: target >= 2 blocks whenever possible (so v7x megacore can
    # shard the 'parallel' axis across its two TensorCores) and size the tile
    # so the last block is mostly full -> minimal padding.
    n_blocks = max(pl.cdiv(m_rows, tm), 2 if m_rows > align else 1)
    tm_eff = _round_up(pl.cdiv(m_rows, n_blocks), align)
    n_blocks = pl.cdiv(m_rows, tm_eff)
    m_pad = n_blocks * tm_eff

    x2d = x.reshape(m_rows, e)  # no dtype cast here: the kernel casts in VMEM
    if m_pad != m_rows:
        # Zero rows give finite log-probs and are sliced off below.
        x2d = jnp.pad(x2d, ((0, m_pad - m_rows), (0, 0)))

    # Weight is a small static parameter: cast once to bf16, keep (V, E)
    # layout so no HBM transpose copy is ever materialized.
    w = weight.astype(jnp.bfloat16)

    cost = pl.CostEstimate(
        flops=2 * m_pad * v * e,
        transcendentals=2 * m_pad * v,  # tanh + exp per logit
        bytes_accessed=(
            m_pad * e * jnp.dtype(x.dtype).itemsize
            + v * e * 2
            + m_pad * v * jnp.dtype(out_dtype).itemsize
        ),
    )

    out2d = pl.pallas_call(
        generator_kernel,
        out_shape=jax.ShapeDtypeStruct((m_pad, v), out_dtype),
        grid_spec=pltpu.PrefetchScalarGridSpec(
            num_scalar_prefetch=0,
            grid=(n_blocks,),
            in_specs=[
                pl.BlockSpec((tm_eff, e), lambda i: (i, 0)),  # x row tile
                pl.BlockSpec((v, e), lambda i: (0, 0)),       # full weight, VMEM-resident
            ],
            out_specs=pl.BlockSpec((tm_eff, v), lambda i: (i, 0)),
        ),
        compiler_params=pltpu.CompilerParams(
            dimension_semantics=("parallel",),
        ),
        cost_estimate=cost,
    )(x2d, w)

    return out2d[:m_rows].reshape(*lead, v)


if __name__ == "__main__":
    # Small shapes implied by the module: emb_size=32, vocab_size=128
    batch, seq, emb, vocab = 2, 8, 32, 128

    key = jax.random.PRNGKey(0)
    kx, kw = jax.random.split(key)
    x = jax.random.normal(kx, (batch, seq, emb), dtype=jnp.float32)
    # Deterministic synthetic weight (PyTorch nn.Linear layout: (vocab, emb))
    bound = 1.0 / (emb ** 0.5)
    weight = jax.random.uniform(
        kw, (vocab, emb), dtype=jnp.float32, minval=-bound, maxval=bound
    )

    out = jax.block_until_ready(generator_forward(x, weight))

    # Pure-JAX f32 reference (kernel matmul runs in bf16 -> looser tolerance).
    ref = jax.nn.log_softmax(jnp.tanh(x @ weight.T), axis=-1)
    assert out.shape == (batch, seq, vocab)
    assert out.dtype == x.dtype
    assert jnp.allclose(out, ref, atol=3e-2, rtol=0.0), "mismatch vs reference"

    # Non-divisible row count (padding path): batch*seq = 15.
    x_odd = jax.random.normal(kx, (3, 5, emb), dtype=jnp.float32)
    out_odd = jax.block_until_ready(generator_forward(x_odd, weight))
    ref_odd = jax.nn.log_softmax(jnp.tanh(x_odd @ weight.T), axis=-1)
    assert out_odd.shape == (3, 5, vocab)
    assert jnp.allclose(out_odd, ref_odd, atol=3e-2, rtol=0.0), "padded-path mismatch"

    # bf16 activations: output stays bf16 (no wrapper downcast pass).
    x_bf = x.astype(jnp.bfloat16)
    out_bf = jax.block_until_ready(generator_forward(x_bf, weight))
    ref_bf = jax.nn.log_softmax(jnp.tanh(x_bf.astype(jnp.float32) @ weight.T), axis=-1)
    assert out_bf.dtype == jnp.bfloat16
    assert jnp.allclose(out_bf.astype(jnp.float32), ref_bf, atol=1e-1, rtol=0.0), \
        "bf16-path mismatch"

    print("KERNEL_OK")
</pallas_src>

<mosaic_0001>
module attributes {stable_mosaic.version = 11 : i64} {
  func.func @generator_kernel(%arg0: i32, %arg1: memref<8x32xf32, #tpu.memory_space<vmem>>, %arg2: memref<128x32xbf16, #tpu.memory_space<vmem>>, %arg3: memref<8x128xf32, #tpu.memory_space<vmem>>) attributes {dimension_semantics = [#tpu.dimension_semantics<parallel>], iteration_bounds = array<i64: 2>, scalar_prefetch = 0 : i64, scratch_operands = 0 : i64, tpu.core_type = #tpu.core_type<tc>, window_params = [{transform_indices = @transform_0, window_bounds = array<i64: 8, 32>}, {pipeline_mode = #tpu.pipeline_mode<synchronous>, transform_indices = @transform_1, window_bounds = array<i64: 128, 32>}, {transform_indices = @transform_2, window_bounds = array<i64: 8, 128>}]} {
    %c0 = arith.constant 0 : index
    %c0_0 = arith.constant 0 : index
    %0 = vector.load %arg1[%c0, %c0_0] : memref<8x32xf32, #tpu.memory_space<vmem>>, vector<8x32xf32>
    %1 = arith.truncf %0 : vector<8x32xf32> to vector<8x32xbf16>
    %c0_1 = arith.constant 0 : index
    %c0_2 = arith.constant 0 : index
    %2 = vector.load %arg2[%c0_1, %c0_2] : memref<128x32xbf16, #tpu.memory_space<vmem>>, vector<128x32xbf16>
    %cst = arith.constant dense<0.000000e+00> : vector<8x128xf32>
    %3 = tpu.matmul %1, %2, %cst {dimension_numbers = #tpu.dot_dimension_numbers<[1], [1], [0], [0], [0, 0, 1, 0], [], []>} : vector<8x32xbf16>, vector<128x32xbf16>, vector<8x128xf32> -> vector<8x128xf32>
    %4 = math.tanh %3 : vector<8x128xf32>
    %5 = math.exp %4 : vector<8x128xf32>
    %cst_3 = arith.constant dense<0.000000e+00> : vector<8xf32>
    %6 = vector.multi_reduction <add>, %5, %cst_3 [1] : vector<8x128xf32> to vector<8xf32>
    %7 = vector.shape_cast %6 : vector<8xf32> to vector<8x1xf32>
    %8 = math.log %7 : vector<8x1xf32>
    %9 = vector.broadcast %8 : vector<8x1xf32> to vector<8x128xf32>
    %10 = arith.subf %4, %9 : vector<8x128xf32>
    %c0_4 = arith.constant 0 : index
    %c0_5 = arith.constant 0 : index
    %11 = vector.load %arg3[%c0_4, %c0_5] : memref<8x128xf32, #tpu.memory_space<vmem>>, vector<8x128xf32>
    tpu.vector_store %arg3[%c0_4, %c0_5], %10 {strides = array<i32>} : memref<8x128xf32, #tpu.memory_space<vmem>>, vector<8x128xf32>,
    return
  }
  func.func @transform_0(%arg0: i32) -> (i32, i32) {
    %c0_i32 = arith.constant 0 : i32
    %c0_i32_0 = arith.constant 0 : i32
    return %arg0, %c0_i32 : i32, i32
  }
  func.func @transform_1(%arg0: i32) -> (i32, i32) {
    %c0_i32 = arith.constant 0 : i32
    %c0_i32_0 = arith.constant 0 : i32
    %c0_i32_1 = arith.constant 0 : i32
    return %c0_i32, %c0_i32_0 : i32, i32
  }
  func.func @transform_2(%arg0: i32) -> (i32, i32) {
    %c0_i32 = arith.constant 0 : i32
    %c0_i32_0 = arith.constant 0 : i32
    return %arg0, %c0_i32 : i32, i32
  }
}

</mosaic_0001>

<bundles_post_ra>
// kernel: tpu_custom_call.1
= control target key start
LH: loop header
LB: loop body
LE: loop exit
PB: predicated region body
PF: predicated region fallthrough
CT: control target
= control target key end

     0   :  { %7 = vsyncpa [#allocation3], 0  ;;  %s651_s0 = inlined_call_operand.vmem [shape: f32[16,32], index: 0, kind: input, shape index: {}]   ;;  %s652_s1 = inlined_call_operand.vmem [shape: bf16[128,32], index: 1, kind: input, shape index: {}]   ;;  %s653_s2 = inlined_call_operand.hbm [shape: f32[16,128], index: 2, kind: output, shape index: {}]  }
   0x1   :  { %9 = vsyncpa [#allocation3 + $0x1], 0  ;;  %s531_s9 = smov 0   ;;  %s533_s10 = smov 0  }
   0x2   :  { %s535_s11 = smov 0   ;;  %s537_s12 = smov 0  }
   0x3 LB: > { %s552_s13 = sadd.s32 4294967295, %s511_s12   ;;  %s348_s14 = sadd.s32 4294967294, %s511_s12   ;;  %s511_s12 = sphi %s537_s12, %s659_s12   ;;  %s507_s11 = sphi %s535_s11, %s658_s11   ;;  %s503_s10 = sphi %s533_s10, %s657_s10   ;;  %s499_s9 = sphi %s531_s9, %s656_s9  }
   0x4   : > { %s556_s15 = sadd.s32 1, %s511_s12   ;;  %s69_s16 = sadd.s32 1, %s507_s11 }
   0x5   : > { %s66_s17 = ssub.s32 %s511_s12, %s556_s15  ;;  %p79_p0 = scmp.ne.s32.totalorder %s507_s11, %s503_s10 }
   0x6   : > { %p67_p1 = scmp.eq.s32.totalorder %s66_s17, 0  ;;  %p80_p2 = scmp.eq.s32.totalorder %s552_s13, 1 }
   0x7   : > { %p85_p3 = scmp.ne.s32.totalorder %s503_s10, %s499_s9  ;;  %p86_p4 = scmp.eq.s32.totalorder %s348_s14, 1 }
   0x8   : > { %s567_s18 = scalar_select %p67_p1, %s507_s11, %s69_s16  }
   0x9   : > { %p569_p5 = por %p80_p2, %p79_p0  ;;  %p573_p6 = por %p86_p4, %p85_p3 }
   0xa   : > { %p351_p7 = scmp.ge.s32.totalorder %s511_s12, 1  ;;  %p114_p8 = scmp.lt.s32.totalorder %s511_s12, 3 }
   0xc   : > { %p115_p9 = pnand %p351_p7, %p114_p8 }
   0xd   : > { %p135_p10 = scmp.lt.s32.totalorder (!%p115_p9), %s552_s13, 1  ;;  %s132_s23 = sand.u32 (!%p115_p9), 1, %s503_s10  }
   0xe   : > { %118 = sbr.rel (%p115_p9) target bundleno = 476 (0x1dc), region = 28  ;;  %s352_s24 = sshll.u32 (!%p115_p9), %s132_s23, 3 }
   0xf   : > { %s364_s25 = sshll.u32 (!%p115_p9), %s552_s13, 7  ;;  %s134_s26 = scalar_lea.vmem (!%p115_p9), [#allocation2], %s352_s24 }
  0x10   : > { %s289_s27 = sshll.u32 (!%p115_p9), %s134_s26, 4  ;;  %s287_s30 = scalar_lea.hbm (!%p115_p9), %s653_s2, %s364_s25  ;;  %s290_s27 = int_to_ptr.vmem [resolvable:$true] %s289_s27 }
  0x11   : > { %s276_s3 = scalar_lea.sflag (!%p115_p9), [#allocation3], %s132_s23  ;;  %s451_s4 = scalar_lea.vmem (!%p115_p9), %s290_s27, 128 }
  0x12   : > { %p452_p11 = scmp.ne.s32.totalorder (!%p115_p9), %s290_s27, %s451_s4  ;;  %s515_s5 = smov (!%p115_p9), [#allocation2]  }
  0x13   : > { %v437_v0 = vld [vmem:[%s652_s1 + $0x38] sm:$0xff]   ;;  %v513_v1 = vmov 0.0   ;;  %vm198_vm0 = vcmask 261120   ;;  %v438_v3 = vld [vmem:[%s652_s1 + $0x30] sm:$0xff]   ;;  %vm514_vm1 = vmmov 0   ;;  %v439_v5 = vld [vmem:[%s652_s1 + $0x28] sm:$0xff]  }
  0x14   : > { %376 = vmatprep.subr.bf16.mxu0 %v513_v1  ;;  %v224_v2 = vsel %vm198_vm0, %v437_v0, 0  ;;  %v221_v4 = vsel %vm198_vm0, %v438_v3, 0  ;;  %392 = vmatprep.mubr.msk.bf16.mxu0 %vm514_vm1, %v513_v1  ;;  %v218_v6 = vsel %vm198_vm0, %v439_v5, 0  ;;  %v440_v7 = vld [vmem:[%s652_s1 + $0x20] sm:$0xff]   ;;  %v441_v9 = vld [vmem:[%s652_s1 + $0x18] sm:$0xff]   ;;  %v442_v11 = vld [vmem:[%s652_s1 + $0x10] sm:$0xff]   ;;  %p453_p12 = pnand %p452_p11, %p569_p5 }
  0x15   : > { %377 = vmatpush3.bf16.xpose.msra.mxu0 %v224_v2  ;;  %v215_v8 = vsel %vm198_vm0, %v440_v7, 0  ;;  %v212_v10 = vsel %vm198_vm0, %v441_v9, 0  ;;  %v209_v12 = vsel %vm198_vm0, %v442_v11, 0  ;;  %v443_v13 = vld [vmem:[%s652_s1 + $0x8] sm:$0xff]   ;;  %s136_s7 = scalar_select %p135_p10, %s552_s13, 1  ;;  %v444_v15 = vld [vmem:[%s652_s1] sm:$0xff]  }
  0x16   : > { %378 = vmatprep.subr.bf16.mxu0 %v513_v1  ;;  %v206_v14 = vsel %vm198_vm0, %v443_v13, 0  ;;  %v203_v16 = vsel %vm198_vm0, %v444_v15, 0  ;;  %p454_p13 = pneg %p453_p12  ;;  %s455_s6 = sshll.u32 %s515_s5, 4  ;;  %s456_s6 = int_to_ptr.vmem [resolvable:$false] %s455_s6 }
  0x17   : > { %s353_s16 = sshll.u32 %s136_s7, 3  ;;  %s457_s13 = scalar_lea.vmem %s456_s6, 256 }
  0x18   : > { %s138_s22 = scalar_lea.vmem %s651_s0, %s353_s16  ;;  %p458_p0 = scmp.lt.s32.totalorder %s290_s27, %s456_s6 }
  0x19   : > { %v140_v17 = vld [vmem:[%s138_s22] sm:$0xff]  ;;  %p459_p1 = scmp.lt.s32.totalorder %s457_s13, %s451_s4 }
  0x1a   : > { %v141_v18 = vpack.c.bf16 %v140_v17, %v140_v17 }
  0x1b   : > { %p460_p2 = por %p459_p1, %p458_p0 }
  0x1d   : > { %379 = vmatpush3.bf16.xpose.msra.mxu0 %v221_v4  ;;  %p461_p3 = pnand %p460_p2, %p454_p13 }
  0x1e   : > { %380 = vmatprep.subr.bf16.mxu0 %v513_v1 }
  0x25   : > { %381 = vmatpush3.bf16.xpose.msra.mxu0 %v218_v6 }
  0x26   : > { %382 = vmatprep.subr.bf16.mxu0 %v513_v1 }
  0x2d   : > { %383 = vmatpush3.bf16.xpose.msra.mxu0 %v215_v8 }
  0x2e   : > { %384 = vmatprep.subr.bf16.mxu0 %v513_v1 }
  0x35   : > { %385 = vmatpush3.bf16.xpose.msra.mxu0 %v212_v10 }
  0x36   : > { %386 = vmatprep.subr.bf16.mxu0 %v513_v1 }
  0x3d   : > { %387 = vmatpush3.bf16.xpose.msra.mxu0 %v209_v12 }
  0x3e   : > { %388 = vmatprep.subr.bf16.mxu0 %v513_v1 }
  0x45   : > { %389 = vmatpush3.bf16.xpose.msra.mxu0 %v206_v14 }
  0x46   : > { %390 = vmatprep.subr.bf16.mxu0 %v513_v1 }
  0x4d   : > { %391 = vmatpush3.bf16.xpose.msra.mxu0 %v203_v16 }
  0x54   : > { %393 = vmatmul.mubr.msk.bf16.vlgmr.msra.gmra.mxu0 %vm198_vm0, %v141_v18 }
 0x114   : > { %v260_v19 = vpop.f32.mrf.mxu0 }
 0x115   : > { %445 = vtanh.f32 %v260_v19 }
 0x116   : > { %v394_v20 = vpop.f32.mrf.mxu0 }
 0x118   : > { %v263_v21 = vpop.f32.mrf.mxu0 }
 0x11a   : > { %v395_v22 = vpop.f32.mrf.mxu0 }
 0x122   : > { %v446_v23 = vpop.eup %445 }
 0x123   : > { %v267_v24 = vmul.f32 1.442695, %v446_v23 }
 0x125   : > { %447 = vpow2.f32 %v267_v24 }
 0x132   : > { %v448_v25 = vpop.eup %447 }
 0x133   : > { %269 = vadd.xlane.f32.xlu0 %v448_v25 }
 0x1bc   : > { %v270_v26 = vpop.xlane.xlu0 %269 }
 0x1bd   : > { %449 = vlog2.f32 %v270_v26 }
 0x1ca   : > { %v450_v27 = vpop.eup %449 }
 0x1cb   : > { %v272_v28 = vmul.f32 0.6931472, %v450_v27 }
 0x1cd   : > { %v273_v29 = vsub.f32 %v446_v23, %v272_v28 }
 0x1cf   : > { %274 = vst [vmem:[%s134_s26] sm:$0xff] %v273_v29 }
 0x1d0   : > { %464 = shalt.err (!%p461_p3)
}
 0x1d1   : > { %s465_s7 = scalar_lea.hbm %s287_s30, 128  ;;  %s469_s16 = scalar_lea.hbm %s653_s2, 256 }
 0x1d2   : > { %p466_p4 = scmp.ne.s32.totalorder %s287_s30, %s465_s7  ;;  %p470_p9 = scmp.lt.s32.totalorder %s287_s30, %s653_s2 }
 0x1d3   : > { %p471_p10 = scmp.lt.s32.totalorder %s469_s16, %s465_s7 }
 0x1d4   : > { %p467_p7 = pnand %p466_p4, %p569_p5 }
 0x1d5   : > { %p472_p11 = por %p471_p10, %p470_p9 }
 0x1d6   : > { %p468_p8 = pneg %p467_p7 }
 0x1d8   : > { %p473_p12 = pnand %p472_p11, %p468_p8 }
 0x1da   : > { %476 = shalt.err (!%p473_p12)
}
 0x1db   : > { %396 = dma.vmem_to_hbm [thread:$0]  (%p569_p5), %s290_s27, 128, %s287_s30, %s276_s3  }
 0x1dc PF: > { %p402_p13 = scmp.ge.s32.totalorder %s511_s12, 2  ;;  %s301_s22 = sand.u32 1, %s499_s9  }
 0x1dd   : > { %s302_s23 = scalar_lea.sflag [#allocation3], %s301_s22 }
 0x1de   : > { %p399_p0 = pnand %p402_p13, %p573_p6 }
 0x1e0   : > { %p400_p1 = pneg %p399_p0 }
 0x1e2   : > { %494 = dma.done.wait (%p400_p1), %s302_s23, 128  }
 0x1e3   : > { %496 = vsyncadd (%p400_p1), %s302_s23, 4294967168  ;;  %p12_p2 = scmp.ge.s32.totalorder %s556_s15, 4   ;;  %s656_s9 = smov %s503_s10 }
 0x1e4   : > { %s657_s10 = smov %s507_s11  ;;  %s658_s11 = smov %s567_s18 }
 0x1e5   : > { %s659_s12 = smov %s556_s15  ;;  %14 = sbr.rel (!%p12_p2) target bundleno = 3 (0x3), region = 63 }
 0x1ea   :  { %307 = vsyncpa [#allocation3], 1 }
 0x1eb   :  { %309 = vsyncpa [#allocation3 + $0x1], 1 }

</bundles_post_ra>
